<compile_context>
chip_gen: v7x
topology: tpu7x:2x2x1
jax: 0.10.0
libtpu: 0.0.40
codegen_flags: <defaults>
</compile_context>

<pallas_src>
import functools

import jax
import jax.numpy as jnp
from jax import lax
from jax.experimental import pallas as pl
from jax.experimental.pallas import tpu as pltpu


def _depth_to_space_kernel(x_ref, o_ref, *, block_size, collapse_rows):
    """One grid step handles a (Bn batch, Rt fused-row) tile.

    x_ref: (Bn, b*b, Rt, W)   input block, channel split k = i*b + j (k major)
    o_ref: (Bn, Rt, b*W*b)    output block of the fused NCHW view;
                              row = c*H + h, col = i*(W*b) + (w*b + j)
    """
    b = block_size
    Bn, _, Rt, W = x_ref.shape
    Wb = W * b

    # 0/1 lane-scatter masks S_j[w, v] = 1 iff v == w*b + j (built in-kernel
    # once per grid step — a couple of vregs of VPU work, no HBM operand).
    w_in = lax.broadcasted_iota(jnp.int32, (W, Wb), 0)
    w_out = lax.broadcasted_iota(jnp.int32, (W, Wb), 1)
    scatter = [(w_out == w_in * b + j).astype(x_ref.dtype) for j in range(b)]
    if not collapse_rows:
        # Batched-matmul fallback (Rt not a sublane multiple with Bn > 1):
        # broadcast once, outside the i/j loops (JAX doesn't CSE broadcasts).
        scatter_b = [jnp.broadcast_to(s, (Bn, W, Wb)) for s in scatter]

    if x_ref.dtype == jnp.float32:
        # Exact: 0/1 rhs, HIGHEST reconstructs the f32 payload exactly.
        precision, acc_dtype = lax.Precision.HIGHEST, jnp.float32
    else:
        # bf16/narrow payload: every output is (value * 1) -> pop at out dtype.
        precision, acc_dtype = None, o_ref.dtype

    for i in range(b):
        # h-interleave is free: rows h_out = h*b + i occupy the contiguous
        # lane segment [i*Wb, (i+1)*Wb) of the fused output view.
        acc = None
        for j in range(b):
            x_ij = x_ref[:, i * b + j]                      # (Bn, Rt, W)
            if collapse_rows:
                # Layout-preserving collapse (Rt % sublane == 0 or Bn == 1):
                # one big (Bn*Rt, W) x (W, Wb) MXU scatter.
                y = jnp.dot(x_ij.reshape(Bn * Rt, W), scatter[j],
                            preferred_element_type=acc_dtype,
                            precision=precision).reshape(Bn, Rt, Wb)
            else:
                y = jnp.einsum('nrw,nwv->nrv', x_ij, scatter_b[j],
                               preferred_element_type=acc_dtype,
                               precision=precision)
            # Disjoint columns (exact zeros elsewhere) -> the sum is exact.
            acc = y if acc is None else acc + y
        o_ref[:, :, i * Wb:(i + 1) * Wb] = acc.astype(o_ref.dtype)


def _physical_vmem_bytes():
    """Per-core VMEM: 128 MiB on v5e/v6e, 64 MiB on v7x (conservative default)."""
    try:
        return int(pltpu.get_tpu_info().vmem_capacity_bytes)
    except Exception:
        return 64 * 1024 * 1024


def _row_tile_candidates(R, sublane):
    """Divisors of R usable as the second-minor block size, descending."""
    return [d for d in range(R, 0, -1)
            if R % d == 0 and (d == R or d % sublane == 0)]


def _pick_tiles(B, R, per_row_bytes, sublane, target_bytes):
    """Choose (Bn, Rt): whole batch elements and fused rows per grid step.

    Targets ~target_bytes of in+out payload per step (the measured HBM
    roofline knee is ~4 MiB), while keeping >= 2 grid steps whenever the
    problem allows so v7x can shard the parallel axes over its 2 TensorCores
    (the extra ~0.35 us step is negligible on single-core v5e/v6e).
    """
    row_tiles = _row_tile_candidates(R, sublane)
    per_batch = R * per_row_bytes
    if per_batch <= target_bytes:
        cap = min(B, max(1, target_bytes // per_batch))
        if B > 1:
            cap = max(1, min(cap, B // 2))          # >= 2 batch steps
        bn = next(d for d in range(cap, 0, -1) if B % d == 0)
        rt = R
        if B // bn == 1 and len(row_tiles) > 1:
            rt = row_tiles[1]                       # B == 1 -> split rows
        return bn, rt
    # A single batch element already exceeds the target: tile the fused rows.
    for rt in row_tiles:
        if rt * per_row_bytes <= target_bytes:
            return 1, rt
    return 1, row_tiles[-1]


def depth_to_space(x, block_size):
    B, C, H, W = x.shape
    b = block_size
    assert C % (b * b) == 0, "channels must be divisible by block_size**2"
    sd = C // (b * b)
    R = sd * H                       # fused (c, h) rows
    Wb = W * b

    # Free row-major views:
    #   input : channel = (i*b + j)*sd + c  ->  (B, b*b, sd*H, W)
    #   output: NCHW (B, sd, H*b, W*b)     ==   (B, sd*H, b*W*b)
    #           with row = c*H + h, col = i*(W*b) + (w*b + j)
    x_r = x.reshape(B, b * b, R, W)

    itemsize = jnp.dtype(x.dtype).itemsize
    sublane = max(8, 32 // itemsize)                 # 8 (f32) / 16 (bf16) / 32 (i8)
    per_row_bytes = 2 * (b * b) * W * itemsize       # read + write per (n, fused row)

    vmem_cap = _physical_vmem_bytes()
    target_bytes = max(4 << 20, min(16 << 20, vmem_cap // 10))
    Bn, Rt = _pick_tiles(B, R, per_row_bytes, sublane, target_bytes)
    grid = (B // Bn, R // Rt)

    payload = Bn * Rt * per_row_bytes                # per-step in + out bytes
    vmem_limit = int(min(3 * vmem_cap // 4, max(32 << 20, 4 * payload)))

    collapse_rows = (Bn == 1) or (Rt % sublane == 0)

    n_passes = 6 if x.dtype == jnp.float32 else 1    # HIGHEST f32 = 6 bf16 passes
    bytes_accessed = 2 * B * C * H * W * itemsize    # mem-bound permutation
    flops = 2 * B * C * H * W * Wb * n_passes        # one-hot scatter matmuls

    out_flat = pl.pallas_call(
        functools.partial(_depth_to_space_kernel, block_size=b,
                          collapse_rows=collapse_rows),
        out_shape=jax.ShapeDtypeStruct((B, R, b * Wb), x.dtype),
        grid_spec=pltpu.PrefetchScalarGridSpec(
            num_scalar_prefetch=0,
            grid=grid,
            in_specs=[pl.BlockSpec((Bn, b * b, Rt, W),
                                   lambda n, r: (n, 0, r, 0))],
            out_specs=pl.BlockSpec((Bn, Rt, b * Wb),
                                   lambda n, r: (n, r, 0)),
        ),
        compiler_params=pltpu.CompilerParams(
            dimension_semantics=("parallel", "parallel"),
            vmem_limit_bytes=vmem_limit),
        cost_estimate=pl.CostEstimate(
            flops=flops, transcendentals=0, bytes_accessed=bytes_accessed),
    )(x_r)

    # Free reshape back to NCHW.
    return out_flat.reshape(B, sd, H * b, W * b)


def depth_to_space_reference(x, block_size):
    # Pure-JAX reference mirroring the PyTorch module exactly.
    B, C, H, W = x.shape
    b = block_size
    sd = C // (b * b)
    t = x.reshape(B, b, b, sd, H, W)           # (n, i, j, c, h, w)
    t = jnp.transpose(t, (0, 3, 4, 1, 5, 2))   # (n, c, h, i, w, j)
    return t.reshape(B, sd, H * b, W * b)


if __name__ == "__main__":
    block_size = 2  # module parameter (no learnable weights)

    # Config 1: canonical small shape.
    x = jax.random.normal(jax.random.PRNGKey(0), (2, 4, 16, 16), dtype=jnp.float32)
    y = jax.block_until_ready(depth_to_space(x, block_size))
    y_ref = depth_to_space_reference(x, block_size)
    assert y.shape == (2, 1, 32, 32), y.shape
    if not jnp.allclose(y, y_ref, rtol=1e-5, atol=1e-5):
        raise AssertionError("Pallas DepthToSpace mismatch (2,4,16,16)")

    # Config 2: sd > 1 with a batched block (Bn = 2) -> collapsed 2-D matmul.
    x2 = jax.random.normal(jax.random.PRNGKey(1), (4, 16, 8, 8), dtype=jnp.float32)
    y2 = jax.block_until_ready(depth_to_space(x2, block_size))
    assert y2.shape == (4, 4, 16, 16), y2.shape
    if not jnp.allclose(y2, depth_to_space_reference(x2, block_size),
                        rtol=1e-5, atol=1e-5):
        raise AssertionError("Pallas DepthToSpace mismatch (4,16,8,8)")

    # Config 3: B == 1 -> row-tiled grid (Rt < R) so there are still 2 steps.
    x3 = jax.random.normal(jax.random.PRNGKey(2), (1, 8, 16, 16), dtype=jnp.float32)
    y3 = jax.block_until_ready(depth_to_space(x3, block_size))
    assert y3.shape == (1, 2, 32, 32), y3.shape
    if not jnp.allclose(y3, depth_to_space_reference(x3, block_size),
                        rtol=1e-5, atol=1e-5):
        raise AssertionError("Pallas DepthToSpace mismatch (1,8,16,16)")

    # Config 4: bf16 payload (scatter matmul popped directly at bf16).
    x4 = jax.random.normal(jax.random.PRNGKey(3), (2, 4, 8, 8)).astype(jnp.bfloat16)
    y4 = jax.block_until_ready(depth_to_space(x4, block_size))
    y4_ref = depth_to_space_reference(x4, block_size)
    assert y4.shape == (2, 1, 16, 16), y4.shape
    if not jnp.allclose(y4.astype(jnp.float32), y4_ref.astype(jnp.float32),
                        rtol=1e-2, atol=1e-2):
        raise AssertionError("Pallas DepthToSpace mismatch (bf16)")

    print("KERNEL_OK")
</pallas_src>

<mosaic_0001>
module attributes {stable_mosaic.version = 11 : i64} {
  func.func @_depth_to_space_kernel(%arg0: i32, %arg1: i32, %arg2: memref<1x4x16x16xf32, #tpu.memory_space<vmem>>, %arg3: memref<1x16x64xf32, #tpu.memory_space<vmem>>) attributes {dimension_semantics = [#tpu.dimension_semantics<parallel>, #tpu.dimension_semantics<parallel>], iteration_bounds = array<i64: 2, 1>, scalar_prefetch = 0 : i64, scratch_operands = 0 : i64, tpu.core_type = #tpu.core_type<tc>, window_params = [{transform_indices = @transform_0, window_bounds = array<i64: 1, 4, 16, 16>}, {transform_indices = @transform_1, window_bounds = array<i64: 1, 16, 64>}]} {
    %0 = tpu.iota {dimensions = array<i32: 0>} : vector<16x32xi32>
    %1 = tpu.iota {dimensions = array<i32: 1>} : vector<16x32xi32>
    %c2_i32 = arith.constant 2 : i32
    %2 = vector.broadcast %c2_i32 : i32 to vector<16x32xi32>
    %3 = arith.muli %0, %2 : vector<16x32xi32>
    %c0_i32 = arith.constant 0 : i32
    %4 = vector.broadcast %c0_i32 : i32 to vector<16x32xi32>
    %5 = arith.addi %3, %4 : vector<16x32xi32>
    %6 = arith.cmpi eq, %1, %5 : vector<16x32xi32>
    %7 = arith.extui %6 : vector<16x32xi1> to vector<16x32xi32>
    %8 = arith.sitofp %7 : vector<16x32xi32> to vector<16x32xf32>
    %c2_i32_0 = arith.constant 2 : i32
    %9 = vector.broadcast %c2_i32_0 : i32 to vector<16x32xi32>
    %10 = arith.muli %0, %9 : vector<16x32xi32>
    %c1_i32 = arith.constant 1 : i32
    %11 = vector.broadcast %c1_i32 : i32 to vector<16x32xi32>
    %12 = arith.addi %10, %11 : vector<16x32xi32>
    %13 = arith.cmpi eq, %1, %12 : vector<16x32xi32>
    %14 = arith.extui %13 : vector<16x32xi1> to vector<16x32xi32>
    %15 = arith.sitofp %14 : vector<16x32xi32> to vector<16x32xf32>
    %c0 = arith.constant 0 : index
    %c0_1 = arith.constant 0 : index
    %c0_2 = arith.constant 0 : index
    %c0_3 = arith.constant 0 : index
    %16 = vector.load %arg2[%c0, %c0_1, %c0_2, %c0_3] : memref<1x4x16x16xf32, #tpu.memory_space<vmem>>, vector<1x1x16x16xf32>
    %17 = vector.shape_cast %16 : vector<1x1x16x16xf32> to vector<1x16x16xf32>
    %18 = vector.shape_cast %17 : vector<1x16x16xf32> to vector<16x16xf32>
    %cst = arith.constant dense<0.000000e+00> : vector<16x32xf32>
    %19 = tpu.matmul %18, %8, %cst {dimension_numbers = #tpu.dot_dimension_numbers<[1], [0], [0], [1], [0, 0, 1, 1], [], []>, precision = #tpu.contract_precision<fp32>} : vector<16x16xf32>, vector<16x32xf32>, vector<16x32xf32> -> vector<16x32xf32>
    %20 = vector.shape_cast %19 : vector<16x32xf32> to vector<1x16x32xf32>
    %c0_4 = arith.constant 0 : index
    %c1 = arith.constant 1 : index
    %c0_5 = arith.constant 0 : index
    %c0_6 = arith.constant 0 : index
    %21 = vector.load %arg2[%c0_4, %c1, %c0_5, %c0_6] : memref<1x4x16x16xf32, #tpu.memory_space<vmem>>, vector<1x1x16x16xf32>
    %22 = vector.shape_cast %21 : vector<1x1x16x16xf32> to vector<1x16x16xf32>
    %23 = vector.shape_cast %22 : vector<1x16x16xf32> to vector<16x16xf32>
    %cst_7 = arith.constant dense<0.000000e+00> : vector<16x32xf32>
    %24 = tpu.matmul %23, %15, %cst_7 {dimension_numbers = #tpu.dot_dimension_numbers<[1], [0], [0], [1], [0, 0, 1, 1], [], []>, precision = #tpu.contract_precision<fp32>} : vector<16x16xf32>, vector<16x32xf32>, vector<16x32xf32> -> vector<16x32xf32>
    %25 = vector.shape_cast %24 : vector<16x32xf32> to vector<1x16x32xf32>
    %26 = arith.addf %20, %25 : vector<1x16x32xf32>
    %c0_8 = arith.constant 0 : index
    %c0_9 = arith.constant 0 : index
    %c0_10 = arith.constant 0 : index
    %27 = vector.load %arg3[%c0_8, %c0_9, %c0_10] : memref<1x16x64xf32, #tpu.memory_space<vmem>>, vector<1x16x32xf32>
    tpu.vector_store %arg3[%c0_8, %c0_9, %c0_10], %26 {strides = array<i32>} : memref<1x16x64xf32, #tpu.memory_space<vmem>>, vector<1x16x32xf32>,
    %c0_11 = arith.constant 0 : index
    %c2 = arith.constant 2 : index
    %c0_12 = arith.constant 0 : index
    %c0_13 = arith.constant 0 : index
    %28 = vector.load %arg2[%c0_11, %c2, %c0_12, %c0_13] : memref<1x4x16x16xf32, #tpu.memory_space<vmem>>, vector<1x1x16x16xf32>
    %29 = vector.shape_cast %28 : vector<1x1x16x16xf32> to vector<1x16x16xf32>
    %30 = vector.shape_cast %29 : vector<1x16x16xf32> to vector<16x16xf32>
    %cst_14 = arith.constant dense<0.000000e+00> : vector<16x32xf32>
    %31 = tpu.matmul %30, %8, %cst_14 {dimension_numbers = #tpu.dot_dimension_numbers<[1], [0], [0], [1], [0, 0, 1, 1], [], []>, precision = #tpu.contract_precision<fp32>} : vector<16x16xf32>, vector<16x32xf32>, vector<16x32xf32> -> vector<16x32xf32>
    %32 = vector.shape_cast %31 : vector<16x32xf32> to vector<1x16x32xf32>
    %c0_15 = arith.constant 0 : index
    %c3 = arith.constant 3 : index
    %c0_16 = arith.constant 0 : index
    %c0_17 = arith.constant 0 : index
    %33 = vector.load %arg2[%c0_15, %c3, %c0_16, %c0_17] : memref<1x4x16x16xf32, #tpu.memory_space<vmem>>, vector<1x1x16x16xf32>
    %34 = vector.shape_cast %33 : vector<1x1x16x16xf32> to vector<1x16x16xf32>
    %35 = vector.shape_cast %34 : vector<1x16x16xf32> to vector<16x16xf32>
    %cst_18 = arith.constant dense<0.000000e+00> : vector<16x32xf32>
    %36 = tpu.matmul %35, %15, %cst_18 {dimension_numbers = #tpu.dot_dimension_numbers<[1], [0], [0], [1], [0, 0, 1, 1], [], []>, precision = #tpu.contract_precision<fp32>} : vector<16x16xf32>, vector<16x32xf32>, vector<16x32xf32> -> vector<16x32xf32>
    %37 = vector.shape_cast %36 : vector<16x32xf32> to vector<1x16x32xf32>
    %38 = arith.addf %32, %37 : vector<1x16x32xf32>
    %c0_19 = arith.constant 0 : index
    %c0_20 = arith.constant 0 : index
    %c32 = arith.constant 32 : index
    %39 = vector.load %arg3[%c0_19, %c0_20, %c32] : memref<1x16x64xf32, #tpu.memory_space<vmem>>, vector<1x16x32xf32>
    tpu.vector_store %arg3[%c0_19, %c0_20, %c32], %38 {strides = array<i32>} : memref<1x16x64xf32, #tpu.memory_space<vmem>>, vector<1x16x32xf32>,
    return
  }
  func.func @transform_0(%arg0: i32, %arg1: i32) -> (i32, i32, i32, i32) {
    %c0_i32 = arith.constant 0 : i32
    %c0_i32_0 = arith.constant 0 : i32
    %c0_i32_1 = arith.constant 0 : i32
    return %arg0, %c0_i32, %arg1, %c0_i32_0 : i32, i32, i32, i32
  }
  func.func @transform_1(%arg0: i32, %arg1: i32) -> (i32, i32, i32) {
    %c0_i32 = arith.constant 0 : i32
    %c0_i32_0 = arith.constant 0 : i32
    return %arg0, %arg1, %c0_i32 : i32, i32, i32
  }
}

</mosaic_0001>

<bundles_post_ra>
// kernel: tpu_custom_call.1
= control target key start
LH: loop header
LB: loop body
LE: loop exit
PB: predicated region body
PF: predicated region fallthrough
CT: control target
= control target key end

     0   :  { %6 = vsyncpa [#allocation3], 0  ;;  %s3392_s0 = inlined_call_operand.hbm [shape: f32[2,4,16,16], index: 0, kind: input, shape index: {}]   ;;  %s3393_s1 = inlined_call_operand.hbm [shape: f32[2,16,64], index: 1, kind: output, shape index: {}]  }
   0x1   :  { %8 = vsyncpa [#allocation3 + $0x1], 0 }
   0x2   :  { %9 = vsyncpa [#allocation4], 0 }
   0x3   :  { %11 = vsyncpa [#allocation4 + $0x1], 0  ;;  %s2998_s6 = smov 0   ;;  %s3000_s7 = smov 0  }
   0x4   :  { %s3002_s8 = smov 0   ;;  %s3004_s9 = smov 0  }
   0x5   :  { %s3006_s10 = smov 0   ;;  %s3008_s11 = smov 0  }
   0x6 LB: > { %s2341_s12 = sadd.s32 4294967295, %s2977_s11   ;;  %s2342_s13 = sadd.s32 4294967294, %s2977_s11   ;;  %s2977_s11 = sphi %s3008_s11, %s17_s11   ;;  %s2973_s10 = sphi %s3006_s10, %s3412_s10   ;;  %s2969_s9 = sphi %s3004_s9, %s3411_s9   ;;  %s2965_s8 = sphi %s3002_s8, %s3410_s8   ;;  %s2961_s7 = sphi %s3000_s7, %s3409_s7   ;;  %s2957_s6 = sphi %s2998_s6, %s3408_s6  }
   0x7   : > { %s29_s14 = sadd.s32 1, %s2973_s10  ;;  %s38_s15 = sadd.s32 1, %s2965_s8 }
   0x8   : > { %p31_p0 = scmp.ge.s32.totalorder %s29_s14, 2  ;;  %p45_p1 = scmp.ne.s32.totalorder %s2965_s8, %s2961_s7 }
   0x9   : > { %p46_p2 = scmp.eq.s32.totalorder %s2977_s11, 0  ;;  %p51_p3 = scmp.ne.s32.totalorder %s2961_s7, %s2957_s6 }
   0xa   : > { %s3414_s14 = smov (%p31_p0, %s29_s14), 0  ;;  %p52_p5 = scmp.eq.s32.totalorder %s2341_s12, 0 }
   0xb   : > { %p3039_p4 = por %p46_p2, %p45_p1  ;;  %s33_s17 = ssub.s32 %s2973_s10, %s3414_s14 }
   0xc   : > { %p77_p6 = scmp.eq.s32.totalorder %s2341_s12, 1  ;;  %p36_p7 = scmp.eq.s32.totalorder %s33_s17, 0 }
   0xd   : > { %p3045_p8 = por %p52_p5, %p51_p3  ;;  %p83_p10 = scmp.eq.s32.totalorder %s2342_s13, 1 }
   0xe   : > { %p3049_p9 = por %p77_p6, %p45_p1  ;;  %p2808_p13 = scmp.lt.s32.totalorder %s2977_s11, 2 }
   0xf   : > { %s3054_s20 = scalar_select %p36_p7, %s2965_s8, %s38_s15  }
  0x10   : > { %s3397_s19 = scalar_select %p3049_p9, 1, 0 }
  0x11   : > { %p3056_p11 = por %p83_p10, %p51_p3  ;;  %s103_s22 = sand.u32 1, %s2965_s8  }
  0x12   : > { %s2345_s23 = sshll.u32 %s103_s22, 6  ;;  %s2390_s24 = sshll.u32 %s2973_s10, 10 }
  0x13   : > { %s3398_s21 = scalar_select %p3056_p11, 1, 0 }
  0x14   : > { %s3067_s27 = scalar_lea.hbm %s3392_s0, %s2390_s24  ;;  %s107_s28 = scalar_lea.vmem [#allocation2], %s2345_s23 }
  0x15   : > { %s116_s29 = sshll.u32 %s107_s28, 4  ;;  %p3073_p0 = pnand %p2808_p13, %p3039_p4  ;;  %s3069_s29 = int_to_ptr.vmem [resolvable:$true] %s116_s29 }
  0x16   : > { %s3078_s2 = scalar_lea.sflag [#allocation3], %s103_s22  ;;  %s2865_s3 = scalar_lea.hbm %s3067_s27, 1024 }
  0x17   : > { %p2866_p2 = scmp.ne.s32.totalorder %s3067_s27, %s2865_s3  ;;  %p2867_p3 = pneg %p3073_p0 }
  0x18   : > { %s2870_s12 = scalar_lea.hbm %s3392_s0, 2048  ;;  %p2871_p4 = scmp.lt.u32.totalorder %s3067_s27, %s3392_s0 }
  0x19   : > { %p2868_p5 = pnand %p2867_p3, %p2866_p2  ;;  %p2872_p7 = scmp.lt.u32.totalorder %s2870_s12, %s2865_s3 }
  0x1a   : > { %p2874_p13 = scmp.lt.u32.totalorder %s2865_s3, %s3067_s27 }
  0x1b   : > { %p2869_p6 = pneg %p2868_p5  ;;  %p2873_p10 = por %p2872_p7, %p2871_p4 }
  0x1d   : > { %p2875_p12 = por %p2874_p13, %p2873_p10 }
  0x1f   : > { %p2876_p1 = pnand %p2875_p12, %p2869_p6 }
  0x21   : > { %2879 = shalt.err (!%p2876_p1)
}
  0x22   : > { %s2880_s16 = scalar_lea.vmem %s3069_s29, 1024  ;;  %s2979_s17 = smov [#allocation2]  }
  0x23   : > { %p2881_p2 = scmp.ne.s32.totalorder %s3069_s29, %s2880_s16  ;;  %s2885_s22 = sshll.u32 %s2979_s17, 4  ;;  %s2886_s22 = int_to_ptr.vmem [resolvable:$false] %s2885_s22 }
  0x24   : > { %s2887_s23 = scalar_lea.vmem %s2886_s22, 2048  ;;  %p2888_p9 = scmp.lt.s32.totalorder %s3069_s29, %s2886_s22 }
  0x25   : > { %p2883_p5 = pnand %p2881_p2, %p2867_p3  ;;  %p2889_p4 = scmp.lt.s32.totalorder %s2887_s23, %s2880_s16 }
  0x27   : > { %p2884_p11 = pneg %p2883_p5  ;;  %p2890_p7 = por %p2889_p4, %p2888_p9 }
  0x29   : > { %p2891_p10 = pnand %p2890_p7, %p2884_p11 }
  0x2b   : > { %2894 = shalt.err (!%p2891_p10)
}
  0x2c   : > { %s2980_s24 = smov 128   ;;  %s2981_s25 = smov 8  }
  0x2d   : > { %2803 = dma.hbm_to_vmem [thread:$0]  (!%p3073_p0), %s3067_s27, 1024, %s3069_s29, %s3078_s2, %s2980_s24, %s2980_s24, %s2981_s25  }
  0x2e   : > { %p124_p12 = scmp.lt.s32.totalorder %s2977_s11, 3  ;;  %p3400_p1 = scmp.ge.s32.totalorder %s2977_s11, 1 }
  0x30   : > { %p125_p3 = pnand %p3400_p1, %p124_p12 }
  0x31   : > { %s3110_s26 = sand.u32 (!%p125_p3), 1, %s2961_s7  }
  0x32   : > { %128 = sbr.rel (%p125_p3) target bundleno = 509 (0x1fd), region = 24  ;;  %s2349_s28 = sshll.u32 (!%p125_p3), %s3110_s26, 6 }
  0x33   : > { %s131_s3 = scalar_lea.sflag (!%p125_p3), [#allocation3], %s3110_s26  ;;  %s3114_s4 = scalar_lea.vmem (!%p125_p3), [#allocation2], %s2349_s28 }
  0x39   : > { %2948 = dma.done.wait (%p3045_p8), %s131_s3, 1024  }
  0x3a   : > { %2950 = vsyncadd (%p3045_p8), %s131_s3, 4294966272  ;;  %v155_v0 = vlaneseq  ;;  %vm178_vm0 = vcmask 130048   ;;  %v2369_v6 = vld [vmem:[%s3114_s4 + $0x20] sm:$0xff]  ;;  %v2370_v7 = vld [vmem:[%s3114_s4 + $0x28] sm:$0xff]  ;;  %v2982_v8 = vmov 0.0   ;;  %s2350_s18 = sshll.u32 %s3110_s26, 4 }
  0x3b   : > { %v176_v10 = vld [vmem:[%s3114_s4] sm:$0xff]  ;;  %v1207_v11 = vsel %vm178_vm0, %v2369_v6, 0  ;;  %v1210_v12 = vsel %vm178_vm0, %v2370_v7, 0  ;;  %v177_v14 = vld [vmem:[%s3114_s4 + $0x8] sm:$0xff]  ;;  %v2983_v20 = vmov 1.0|1.0  }
  0x3c   : > { %v3120_v1 = vshrl.u32 %v155_v0, 7  ;;  %v3122_v2 = vand.u32 127, %v155_v0  ;;  %v3148_v16 = vand.u32 4294901760, %v1207_v11  ;;  %v3150_v17 = vand.u32 4294901760, %v1210_v12  ;;  %v2377_v52 = vld [vmem:[%s3114_s4 + $0x30] sm:$0xff]  ;;  %v2378_v59 = vld [vmem:[%s3114_s4 + $0x38] sm:$0xff] }
  0x3d   : > { %v180_v19 = vsel %vm178_vm0, %v176_v10, 0  ;;  %v183_v24 = vsel %vm178_vm0, %v177_v14, 0  ;;  %v1718_v53 = vsel %vm178_vm0, %v2377_v52, 0  ;;  %v2361_v54 = vld [vmem:[%s3114_s4 + $0x10] sm:$0xff]  ;;  %v1721_v0 = vsel %vm178_vm0, %v2378_v59, 0  ;;  %s2984_s27 = smov 32  }
  0x3e   : > { %v3125_v3 = vadd.s32 8, %v3120_v1  ;;  %v160_v4 = vmul.u32 2, %v3120_v1  ;;  %v3161_v23 = vand.u32 4294901760, %v180_v19  ;;  %v1280_v25 = vsub.f32 %v1207_v11, %v3148_v16  ;;  %v2362_v1 = vld [vmem:[%s3114_s4 + $0x18] sm:$0xff]  ;;  %s152_s29 = scalar_lea.vmem [#allocation5], %s2350_s18  ;;  %s2391_s30 = sshll.u32 %s2969_s9, 8 }
  0x3f   : > { %v3169_v26 = vsub.f32 %v1210_v12, %v3150_v17  ;;  %v3174_v27 = vand.u32 4294901760, %v183_v24  ;;  %v3219_v57 = vand.u32 4294901760, %v1718_v53  ;;  %v691_v58 = vsel %vm178_vm0, %v2361_v54, 0  ;;  %s2254_s2 = sshll.u32 %s152_s29, 4  ;;  %s3341_s13 = scalar_lea.hbm %s3393_s1, %s2391_s30  ;;  %s3343_s2 = int_to_ptr.vmem [resolvable:$true] %s2254_s2 }
  0x40   : > { %v161_v5 = vmul.u32 2, %v3125_v3  ;;  %vm162_vm1 = vcmp.eq.s32.totalorder %v3122_v2, %v160_v4  ;;  %v253_v30 = vsub.f32 %v180_v19, %v3161_v23  ;;  %v1281_v31 = vand.u32 4294901760, %v1280_v25  ;;  %s2239_s15 = scalar_lea.sflag [#allocation4], %s3110_s26  ;;  %s2895_s16 = scalar_lea.vmem %s3343_s2, 256 }
  0x41   : > { %v2351_v9 = vsel %vm162_vm1, 1.0, %v2982_v8  ;;  %v1291_v32 = vand.u32 4294901760, %v3169_v26  ;;  %v3180_v33 = vsub.f32 %v183_v24, %v3174_v27  ;;  %v168_v49 = vadd.s32 1, %v160_v4  ;;  %p2896_p8 = scmp.ne.s32.totalorder %s3343_s2, %s2895_s16  ;;  %p3405_p9 = scmp.ne.s32.totalorder %s3397_s19, 0 }
  0x42   : > { %vm163_vm2 = vcmp.eq.s32.totalorder %v3122_v2, %v161_v5  ;;  %v3141_v13 = vsub.f32 %v2351_v9, %v2351_v9  ;;  %v254_v36 = vand.u32 4294901760, %v253_v30  ;;  %v1282_v37 = vsub.f32 %v1280_v25, %v1281_v31  ;;  %s2985_s9 = smov [#allocation5]  }
  0x43   : > { %vm3144_vm3 = vmpackc.low %vm163_vm2, %vm162_vm1  ;;  %v2352_v18 = vsel %vm163_vm2, 1.0, %v2982_v8  ;;  %v1292_v38 = vsub.f32 %v3169_v26, %v1291_v32  ;;  %v264_v39 = vand.u32 4294901760, %v3180_v33  ;;  %v169_v50 = vadd.s32 1, %v161_v5  ;;  %p2897_p11 = pnand %p2896_p8, %p3405_p9  ;;  %s2899_s17 = sshll.u32 %s2985_s9, 4  ;;  %s2900_s17 = int_to_ptr.vmem [resolvable:$false] %s2899_s17 }
  0x44   : > { %2705 = vmatprep.subr.msk.bf16.mxu1 %vm3144_vm3, %v2983_v20  ;;  %v275_v21 = vand.u32 4294901760, %v3141_v13  ;;  %v281_v22 = vsub.f32 %v2352_v18, %v2352_v18  ;;  %2657 = vmatprep.subr.msk.bf16.mxu0 %vm3144_vm3, %v2983_v20  ;;  %v255_v41 = vsub.f32 %v253_v30, %v254_v36  ;;  %v1283_v42 = vand.u32 4294901760, %v1282_v37  ;;  %s2901_s22 = scalar_lea.vmem %s2900_s17, 512  ;;  %p2902_p6 = scmp.lt.s32.totalorder %s3343_s2, %s2900_s17 }
  0x45   : > { %2707 = vmatpush3.bf16.msk.msra.mxu1 %vm3144_vm3, %v2983_v20  ;;  %2659 = vmatpush3.bf16.msk.msra.mxu0 %vm3144_vm3, %v2983_v20  ;;  %v1293_v43 = vand.u32 4294901760, %v1292_v38  ;;  %v265_v44 = vsub.f32 %v3180_v33, %v264_v39  ;;  %vm170_vm4 = vcmp.eq.s32.totalorder %v3122_v2, %v168_v49  ;;  %vm171_vm5 = vcmp.eq.s32.totalorder %v3122_v2, %v169_v50  ;;  %p2898_p0 = pneg %p2897_p11  ;;  %p2903_p13 = scmp.lt.s32.totalorder %s2901_s22, %s2895_s16 }
  0x46   : > { %v276_v28 = vsub.f32 %v3141_v13, %v275_v21  ;;  %v282_v29 = vand.u32 4294901760, %v281_v22  ;;  %v2664_v46 = vpack.c.bf16 %v281_v22, %v3141_v13  ;;  %v256_v47 = vand.u32 4294901760, %v255_v41  ;;  %2576 = vmatprep.mubr.f32.mxu1 %v1283_v42  ;;  %vm3259_vm6 = vmpackc.low %vm171_vm5, %vm170_vm4 }
  0x47   : > { %v266_v48 = vand.u32 4294901760, %v265_v44  ;;  %v2353_v55 = vsel %vm170_vm4, 1.0, %v2982_v8  ;;  %v2354_v56 = vsel %vm171_vm5, 1.0, %v2982_v8  ;;  %v3227_v62 = vand.u32 4294901760, %v691_v58  ;;  %p2904_p2 = por %p2903_p13, %p2902_p6 }
  0x48   : > { %v277_v34 = vand.u32 4294901760, %v276_v28  ;;  %v283_v35 = vsub.f32 %v281_v22, %v282_v29  ;;  %2577 = vmatmul.mubr.f32.vlgmr.msra.gmra.mrb[0].mxu1 %v1293_v43  ;;  %2492 = vmatprep.mubr.f32.mxu0 %v256_v47  ;;  %v2672_v51 = vpack.c.bf16 %v282_v29, %v275_v21  ;;  %v3223_v60 = vsub.f32 %v2353_v55, %v2353_v55 }
  0x49   : > { %2583 = vmatprep.mubr.f32.mxu1 %v3148_v16  ;;  %2493 = vmatmul.mubr.f32.vlgmr.msra.gmra.mrb[0].mxu0 %v266_v48  ;;  %v3225_v61 = vsub.f32 %v2354_v56, %v2354_v56  ;;  %v3231_v63 = vsub.f32 %v1718_v53, %v3219_v57  ;;  %v3240_v5 = vand.u32 4294901760, %v1721_v0  ;;  %v3244_v6 = vsub.f32 %v691_v58, %v3227_v62  ;;  %p2905_p5 = pnand %p2904_p2, %p2898_p0 }
  0x4a   : > { %v284_v40 = vand.u32 4294901760, %v283_v35  ;;  %2499 = vmatprep.mubr.f32.mxu0 %v3161_v23  ;;  %v786_v3 = vand.u32 4294901760, %v3223_v60  ;;  %v694_v7 = vsel %vm178_vm0, %v2362_v1, 0  ;;  %vm1200_vm7 = vcmask 261120  }
  0x4b   : > { %v793_v4 = vand.u32 4294901760, %v3225_v61  ;;  %v1792_v8 = vand.u32 4294901760, %v3231_v63  ;;  %v3263_v12 = vand.u32 4294901760, %v694_v7  ;;  %v1801_v13 = vsub.f32 %v1721_v0, %v3240_v5 }
  0x4c   : > { %v2660_v45 = vpack.c.bf16 %v284_v40, %v277_v34  ;;  %v787_v9 = vsub.f32 %v3223_v60, %v786_v3  ;;  %v765_v14 = vand.u32 4294901760, %v3244_v6  ;;  %vm2235_vm8 = vcmask 523520  }
  0x4d   : > { %v794_v10 = vsub.f32 %v3225_v61, %v793_v4  ;;  %v1793_v2 = vsub.f32 %v3231_v63, %v1792_v8  ;;  %v774_v21 = vsub.f32 %v694_v7, %v3263_v12  ;;  %v1802_v22 = vand.u32 4294901760, %v1801_v13 }
  0x4e   : > { %2709 = vmatprep.subr.bf16.mxu1 %v2660_v45  ;;  %2661 = vmatprep.subr.bf16.mxu0 %v2660_v45  ;;  %v788_v18 = vand.u32 4294901760, %v787_v9 }
  0x4f   : > { %2711 = vmatpush3.bf16.msra.mxu1 %v2660_v45  ;;  %2663 = vmatpush3.bf16.msra.mxu0 %v2660_v45  ;;  %v795_v19 = vand.u32 4294901760, %v794_v10  ;;  %v1794_v24 = vand.u32 4294901760, %v1793_v2  ;;  %v1803_v28 = vsub.f32 %v1801_v13, %v1802_v22 }
  0x50   : > { %2713 = vmatprep.subr.bf16.mxu1 %v2664_v46  ;;  %2665 = vmatprep.subr.bf16.mxu0 %v2664_v46 }
  0x52   : > { %2584 = vmatmul.mubr.f32.vlgmr.msra.gmra.mrb[0].mxu1 %v3150_v17  ;;  %2500 = vmatmul.mubr.f32.vlgmr.msra.gmra.mrb[0].mxu0 %v3174_v27 }
  0x53   : > { %2715 = vmatpush3.bf16.msra.mxu1 %v2664_v46  ;;  %2590 = vmatprep.mubr.f32.mxu1 %v1280_v25  ;;  %v2684_v25 = vpack.c.bf16 %v795_v19, %v788_v18 }
  0x54   : > { %2717 = vmatprep.subr.msk.bf16.mxu1 %vm3144_vm3, %v2983_v20  ;;  %2667 = vmatpush3.bf16.msra.mxu0 %v2664_v46 }
  0x55   : > { %2506 = vmatprep.mubr.f32.mxu0 %v253_v30  ;;  %2669 = vmatprep.subr.msk.bf16.mxu0 %vm3144_vm3, %v2983_v20 }
  0x5a   : > { %2591 = vmatmul.mubr.f32.vlgmr.msra.gmra.mrb[0].mxu1 %v3169_v26  ;;  %2507 = vmatmul.mubr.f32.vlgmr.msra.gmra.mrb[0].mxu0 %v3180_v33  ;;  %v775_v26 = vand.u32 4294901760, %v774_v21 }
  0x5b   : > { %2719 = vmatpush3.bf16.msk.msra.mxu1 %vm3144_vm3, %v2983_v20  ;;  %2597 = vmatprep.mubr.f32.mxu1 %v1281_v31 }
  0x5c   : > { %2721 = vmatprep.subr.bf16.mxu1 %v2672_v51  ;;  %2671 = vmatpush3.bf16.msk.msra.mxu0 %vm3144_vm3, %v2983_v20  ;;  %v776_v15 = vsub.f32 %v774_v21, %v775_v26 }
  0x5d   : > { %2513 = vmatprep.mubr.f32.mxu0 %v254_v36  ;;  %2673 = vmatprep.subr.bf16.mxu0 %v2672_v51 }
  0x5e   : > { %v777_v30 = vand.u32 4294901760, %v776_v15 }
  0x62   : > { %2598 = vmatmul.mubr.f32.vlgmr.msra.gmra.mrb[0].mxu1 %v1291_v32  ;;  %2514 = vmatmul.mubr.f32.vlgmr.msra.gmra.mrb[0].mxu0 %v264_v39 }
  0x63   : > { %2723 = vmatpush3.bf16.msra.mxu1 %v2672_v51  ;;  %2604 = vmatprep.mubr.f32.mxu1 %v3148_v16 }
  0x64   : > { %2725 = vmatprep.subr.msk.bf16.mxu1 %vm3144_vm3, %v2983_v20  ;;  %2675 = vmatpush3.bf16.msra.mxu0 %v2672_v51 }
  0x65   : > { %2520 = vmatprep.mubr.f32.mxu0 %v3161_v23  ;;  %2677 = vmatprep.subr.msk.bf16.mxu0 %vm3144_vm3, %v2983_v20 }
  0x6a   : > { %2605 = vmatmul.mubr.f32.vlgmr.msra.gmra.mrb[0].mxu1 %v3150_v17  ;;  %2521 = vmatmul.mubr.f32.vlgmr.msra.gmra.mrb[0].mxu0 %v3174_v27 }
  0x6b   : > { %2727 = vmatpush3.bf16.msk.msra.mxu1 %vm3144_vm3, %v2983_v20  ;;  %2611 = vmatprep.mubr.f32.mxu1 %v3148_v16  ;;  %v766_v16 = vsub.f32 %v3244_v6, %v765_v14 }
  0x6c   : > { %2729 = vmatprep.subr.msk.bf16.mxu1 %vm3259_vm6, %v2983_v20  ;;  %2679 = vmatpush3.bf16.msk.msra.mxu0 %vm3144_vm3, %v2983_v20 }
  0x6d   : > { %2527 = vmatprep.mubr.f32.mxu0 %v3161_v23  ;;  %2681 = vmatprep.subr.msk.bf16.mxu0 %vm3259_vm6, %v2983_v20  ;;  %v767_v29 = vand.u32 4294901760, %v766_v16  ;;  %v1804_v23 = vand.u32 4294901760, %v1803_v28 }
  0x72   : > { %2612 = vmatmul.mubr.f32.vlgmr.msra.gmra.mrb[0].mxu1 %v3150_v17  ;;  %2528 = vmatmul.mubr.f32.vlgmr.msra.gmra.mrb[0].mxu0 %v3174_v27  ;;  %v2688_v17 = vpack.c.bf16 %v3225_v61, %v3223_v60  ;;  %v2696_v27 = vpack.c.bf16 %v793_v4, %v786_v3 }
  0x73   : > { %2731 = vmatpush3.bf16.msk.msra.mxu1 %vm3259_vm6, %v2983_v20  ;;  %2618 = vmatprep.mubr.f32.mxu1 %v1794_v24 }
  0x74   : > { %2733 = vmatprep.subr.bf16.mxu1 %v2684_v25  ;;  %2683 = vmatpush3.bf16.msk.msra.mxu0 %vm3259_vm6, %v2983_v20 }
  0x75   : > { %2534 = vmatprep.mubr.f32.mxu0 %v767_v29  ;;  %2685 = vmatprep.subr.bf16.mxu0 %v2684_v25 }
  0x7a   : > { %2619 = vmatmul.mubr.f32.vlgmr.msra.gmra.mrb[0].mxu1 %v1804_v23  ;;  %2535 = vmatmul.mubr.f32.vlgmr.msra.gmra.mrb[0].mxu0 %v777_v30 }
  0x7b   : > { %2735 = vmatpush3.bf16.msra.mxu1 %v2684_v25  ;;  %2625 = vmatprep.mubr.f32.mxu1 %v3219_v57 }
  0x7c   : > { %2737 = vmatprep.subr.bf16.mxu1 %v2688_v17  ;;  %2687 = vmatpush3.bf16.msra.mxu0 %v2684_v25 }
  0x7d   : > { %2541 = vmatprep.mubr.f32.mxu0 %v3227_v62  ;;  %2689 = vmatprep.subr.bf16.mxu0 %v2688_v17 }
  0x82   : > { %2626 = vmatmul.mubr.f32.vlgmr.msra.gmra.mrb[0].mxu1 %v3240_v5  ;;  %2542 = vmatmul.mubr.f32.vlgmr.msra.gmra.mrb[0].mxu0 %v3263_v12 }
  0x83   : > { %2739 = vmatpush3.bf16.msra.mxu1 %v2688_v17  ;;  %2632 = vmatprep.mubr.f32.mxu1 %v3231_v63 }
  0x84   : > { %2741 = vmatprep.subr.msk.bf16.mxu1 %vm3259_vm6, %v2983_v20  ;;  %2691 = vmatpush3.bf16.msra.mxu0 %v2688_v17 }
  0x85   : > { %2548 = vmatprep.mubr.f32.mxu0 %v3244_v6  ;;  %2693 = vmatprep.subr.msk.bf16.mxu0 %vm3259_vm6, %v2983_v20 }
  0x8a   : > { %2633 = vmatmul.mubr.f32.vlgmr.msra.gmra.mrb[0].mxu1 %v1801_v13  ;;  %2549 = vmatmul.mubr.f32.vlgmr.msra.gmra.mrb[0].mxu0 %v774_v21 }
  0x8b   : > { %2743 = vmatpush3.bf16.msk.msra.mxu1 %vm3259_vm6, %v2983_v20  ;;  %2639 = vmatprep.mubr.f32.mxu1 %v1792_v8 }
  0x8c   : > { %2745 = vmatprep.subr.bf16.mxu1 %v2696_v27  ;;  %2695 = vmatpush3.bf16.msk.msra.mxu0 %vm3259_vm6, %v2983_v20 }
  0x8d   : > { %2555 = vmatprep.mubr.f32.mxu0 %v765_v14  ;;  %2697 = vmatprep.subr.bf16.mxu0 %v2696_v27 }
  0x92   : > { %2640 = vmatmul.mubr.f32.vlgmr.msra.gmra.mrb[0].mxu1 %v1802_v22  ;;  %2556 = vmatmul.mubr.f32.vlgmr.msra.gmra.mrb[0].mxu0 %v775_v26 }
  0x93   : > { %2747 = vmatpush3.bf16.msra.mxu1 %v2696_v27  ;;  %2646 = vmatprep.mubr.f32.mxu1 %v3219_v57 }
  0x94   : > { %2749 = vmatprep.subr.msk.bf16.mxu1 %vm3259_vm6, %v2983_v20  ;;  %2699 = vmatpush3.bf16.msra.mxu0 %v2696_v27 }
  0x95   : > { %2562 = vmatprep.mubr.f32.mxu0 %v3227_v62  ;;  %2701 = vmatprep.subr.msk.bf16.mxu0 %vm3259_vm6, %v2983_v20 }
  0x9a   : > { %2647 = vmatmul.mubr.f32.vlgmr.msra.gmra.mrb[0].mxu1 %v3240_v5  ;;  %2563 = vmatmul.mubr.f32.vlgmr.msra.gmra.mrb[0].mxu0 %v3263_v12 }
  0x9b   : > { %2751 = vmatpush3.bf16.msk.msra.mxu1 %vm3259_vm6, %v2983_v20  ;;  %2653 = vmatprep.mubr.f32.mxu1 %v3219_v57 }
  0x9c   : > { %2703 = vmatpush3.bf16.msk.msra.mxu0 %vm3259_vm6, %v2983_v20  ;;  %2569 = vmatprep.mubr.f32.mxu0 %v3227_v62 }
  0xa2   : > { %2654 = vmatmul.mubr.f32.vlgmr.msra.gmra.mrb[0].mxu1 %v3240_v5  ;;  %2570 = vmatmul.mubr.f32.vlgmr.msra.gmra.mrb[0].mxu0 %v3263_v12 }
 0x175   : > { %v2655_v31 = vpop.f32.mrb[0].mxu1  ;;  %v2571_v33 = vpop.f32.mrb[0].mxu0 }
 0x176   : > { %v2215_v32 = vpop.f32.mrb[1].mxu1  ;;  %1202 = vst.msk [vmem:[%s152_s29 + $0x8] sm:$0xff] %vm1200_vm7, %v2571_v33  ;;  %v1188_v34 = vpop.f32.mrb[1].mxu0 }
 0x177   : > { %2229 = vrot.lane.b32.xlu0 %v2215_v32, %s2984_s27  ;;  %1201 = vst.msk [vmem:[%s152_s29] sm:$0xff] %vm1200_vm7, %v1188_v34 }
 0x17b   : > { %2231 = vrot.lane.b32.xlu0 %v2655_v31, %s2984_s27 }
 0x1e9   : > { %v2230_v20 = vpop.permute.xlu0 %2229 }
 0x1ea   : > { %2236 = vst.msk [vmem:[%s152_s29] sm:$0xff] %vm2235_vm8, %v2230_v20 }
 0x1ed   : > { %v2232_v35 = vpop.permute.xlu0 %2231 }
 0x1ee   : > { %2237 = vst.msk [vmem:[%s152_s29 + $0x8] sm:$0xff] %vm2235_vm8, %v2232_v35 }
 0x1ef   : > { %2908 = shalt.err (!%p2905_p5)
}
 0x1f0   : > { %s2909_s23 = scalar_lea.hbm %s3341_s13, 256  ;;  %s2913_s28 = scalar_lea.hbm %s3393_s1, 512 }
 0x1f1   : > { %p2910_p4 = scmp.ne.s32.totalorder %s3341_s13, %s2909_s23  ;;  %p2914_p12 = scmp.lt.u32.totalorder %s3341_s13, %s3393_s1 }
 0x1f2   : > { %p2915_p1 = scmp.lt.u32.totalorder %s2913_s28, %s2909_s23  ;;  %p2917_p8 = scmp.lt.u32.totalorder %s2909_s23, %s3341_s13 }
 0x1f3   : > { %p2911_p7 = pnand %p2910_p4, %p3405_p9 }
 0x1f4   : > { %p2916_p3 = por %p2915_p1, %p2914_p12 }
 0x1f5   : > { %p2912_p10 = pneg %p2911_p7 }
 0x1f6   : > { %p2918_p11 = por %p2917_p8, %p2916_p3 }
 0x1f8   : > { %p2919_p0 = pnand %p2918_p11, %p2912_p10 }
 0x1fa   : > { %2922 = shalt.err (!%p2919_p0)
}
 0x1fb   : > { %s2986_s18 = smov 128   ;;  %s2987_s27 = smov 8  }
 0x1fc   : > { %2798 = dma.vmem_to_hbm [thread:$0]  (%p3405_p9), %s3343_s2, 256, %s3341_s13, %s2239_s15, %s2986_s18, %s2986_s18, %s2987_s27  }
 0x1fd PF: > { %s2269_s29 = sand.u32 1, %s2957_s6   ;;  %p3406_p6 = scmp.ne.s32.totalorder %s3398_s21, 0 }
 0x1fe   : > { %p3407_p13 = scmp.ge.s32.totalorder %s2977_s11, 2  ;;  %s2270_s30 = scalar_lea.sflag [#allocation4], %s2269_s29 }
 0x200   : > { %p2805_p2 = pnand %p3407_p13, %p3406_p6 }
 0x202   : > { %2952 = dma.done.wait (!%p2805_p2), %s2270_s30, 256  }
 0x203   : > { %2954 = vsyncadd (!%p2805_p2), %s2270_s30, 4294967040  ;;  %s17_s11 = sadd.s32 1, %s2977_s11   ;;  %s3408_s6 = smov %s2961_s7 }
 0x204   : > { %p14_p5 = scmp.ge.s32.totalorder %s17_s11, 4   ;;  %s3409_s7 = smov %s2965_s8 }
 0x205   : > { %s3410_s8 = smov %s3054_s20  ;;  %s3411_s9 = smov %s2973_s10 }
 0x206   : > { %s3412_s10 = smov %s3414_s14  ;;  %16 = sbr.rel (!%p14_p5) target bundleno = 6 (0x6), region = 72 }
 0x20d   :  { %2275 = vsyncpa [#allocation3], 1 }
 0x20e   :  { %2277 = vsyncpa [#allocation3 + $0x1], 1 }
 0x20f   :  { %2278 = vsyncpa [#allocation4], 1 }
 0x210   :  { %2280 = vsyncpa [#allocation4 + $0x1], 1 }

</bundles_post_ra>
